<compile_context>
chip_gen: v6e
topology: v6e:2x2x1
jax: 0.10.0
libtpu: 0.0.40
codegen_flags: <defaults>
</compile_context>

<pallas_src>
import functools

import jax
import jax.numpy as jnp
from jax.experimental import pallas as pl
from jax.experimental.pallas import tpu as pltpu

_VMEM_LIMIT = 48 * 1024 * 1024   # explicit scoped-VMEM cap; tiles sized well below it
_LN_EPS = 1e-5


def _round_up(x, m):
    return (x + m - 1) // m * m


# -----------------------------------------------------------------------------
# Kernel 1: fused per-relation feature transform
#   H = X @ W_flat, W_flat = concat_r(W[r]) along output lanes (R*Dout_pad).
#   Row-tiled; bf16 in / bf16 out, f32 MXU accumulation.
# -----------------------------------------------------------------------------
def _xw_kernel(x_ref, w_ref, h_ref):
    h_ref[...] = jnp.dot(
        x_ref[...], w_ref[...], preferred_element_type=jnp.float32
    ).astype(h_ref.dtype)


def rgcn_transform(x_bf16, w_flat_bf16, *, tn):
    N, Din = x_bf16.shape
    _, C = w_flat_bf16.shape            # C = R * Dout_pad (multiple of 128)
    return pl.pallas_call(
        _xw_kernel,
        out_shape=jax.ShapeDtypeStruct((N, C), jnp.bfloat16),
        grid_spec=pltpu.PrefetchScalarGridSpec(
            num_scalar_prefetch=0,
            grid=(N // tn,),
            in_specs=[
                pl.BlockSpec((tn, Din), lambda i: (i, 0)),   # X row tile
                pl.BlockSpec((Din, C), lambda i: (0, 0)),    # W_flat resident (small)
            ],
            out_specs=pl.BlockSpec((tn, C), lambda i: (i, 0)),
        ),
        compiler_params=pltpu.CompilerParams(
            dimension_semantics=("parallel",),
            vmem_limit_bytes=_VMEM_LIMIT),
    )(x_bf16, w_flat_bf16)


# -----------------------------------------------------------------------------
# Kernel 2: row- and k-tiled relational aggregation with fused epilogue
#   out[i_tile] = LN( sum_r sum_k A[r, i_tile, k_tile] @ H[k_tile, r] ) [ReLU] [+res]
# Accumulation in the resident f32 output block; A and H streamed as bf16.
# -----------------------------------------------------------------------------
def _prop_ln_kernel(h_ref, a_ref, g_ref, b_ref, *rest, relu, eps, inv_d,
                    has_residual):
    if has_residual:
        res_ref, o_ref = rest
    else:
        (o_ref,) = rest

    r = pl.program_id(1)
    k = pl.program_id(2)

    @pl.when((r == 0) & (k == 0))
    def _():
        o_ref[...] = jnp.zeros_like(o_ref)

    # bf16 x bf16 MXU matmul, f32 accumulate directly into the output block.
    o_ref[...] += jnp.dot(a_ref[...], h_ref[...],
                          preferred_element_type=jnp.float32)

    @pl.when((r == pl.num_programs(1) - 1) & (k == pl.num_programs(2) - 1))
    def _():
        x = o_ref[...]
        # Single-pass LN stats over the *actual* feature width; padded lanes
        # are exactly zero (zero-padded weights), so the sums are unaffected.
        mean = jnp.sum(x, axis=-1, keepdims=True) * inv_d
        ex2 = jnp.sum(x * x, axis=-1, keepdims=True) * inv_d
        var = ex2 - mean * mean
        y = (x - mean) * jax.lax.rsqrt(var + eps)
        y = y * g_ref[...] + b_ref[...]
        if relu:
            y = jnp.maximum(y, 0.0)
        if has_residual:
            y = y + res_ref[...]
        o_ref[...] = y


def rgcn_layer(x, w_flat_bf16, adj_bf16, gamma, beta, residual=None, *,
               relu, d_actual, dout_pad, tm, tk, eps=_LN_EPS):
    N_pad = x.shape[0]
    R = adj_bf16.shape[0]

    # H = X @ W_flat once (bf16), shape (N_pad, R*dout_pad).
    h = rgcn_transform(x.astype(jnp.bfloat16), w_flat_bf16, tn=tm)

    has_residual = residual is not None
    kern = functools.partial(_prop_ln_kernel, relu=relu, eps=eps,
                             inv_d=1.0 / float(d_actual),
                             has_residual=has_residual)

    in_specs = [
        pl.BlockSpec((tk, dout_pad), lambda i, r, k: (k, r)),              # H k-tile of rel r
        pl.BlockSpec((pl.Squeezed(), tm, tk), lambda i, r, k: (r, i, k)),  # A[r] (dst,src) tile
        pl.BlockSpec((1, dout_pad), lambda i, r, k: (0, 0)),               # gamma
        pl.BlockSpec((1, dout_pad), lambda i, r, k: (0, 0)),               # beta
    ]
    inputs = [h, adj_bf16, gamma.reshape(1, dout_pad), beta.reshape(1, dout_pad)]
    if has_residual:
        in_specs.append(pl.BlockSpec((tm, dout_pad), lambda i, r, k: (i, 0)))
        inputs.append(residual)

    return pl.pallas_call(
        kern,
        out_shape=jax.ShapeDtypeStruct((N_pad, dout_pad), jnp.float32),
        grid_spec=pltpu.PrefetchScalarGridSpec(
            num_scalar_prefetch=0,
            grid=(N_pad // tm, R, N_pad // tk),   # rows parallel; (r, k) reduction
            in_specs=in_specs,
            out_specs=pl.BlockSpec((tm, dout_pad), lambda i, r, k: (i, 0)),
        ),
        compiler_params=pltpu.CompilerParams(
            dimension_semantics=("parallel", "arbitrary", "arbitrary"),
            vmem_limit_bytes=_VMEM_LIMIT),
    )(*inputs)


# -----------------------------------------------------------------------------
# Forward pass (glue in plain JAX: embedding gather, dense adjacency, padding).
# -----------------------------------------------------------------------------
def simple_rgcn_forward(params, node_ids, edge_index, edge_type, *, tile=256):
    x = params["embedding"][node_ids].astype(jnp.float32)       # (N, E) gather (glue)
    N, E_dim = x.shape
    w1, w2 = params["weight1"], params["weight2"]
    R, _, H_dim = w1.shape

    tm = tk = tile
    N_pad = _round_up(N, tile)
    H_pad = _round_up(H_dim, 128)     # layer-1 output lanes
    E_pad = _round_up(E_dim, 128)     # layer-2 output lanes (lane-dense store)

    # Dense per-relation adjacency with edge multiplicities, streamed as bf16
    # (exact for counts <= 256).
    src, dst = edge_index[0], edge_index[1]
    adj = jnp.zeros((R, N_pad, N_pad), jnp.float32).at[edge_type, dst, src].add(1.0)
    adj = adj.astype(jnp.bfloat16)
    # TODO(synk): replace the dense O(R*N^2) adjacency with a scalar-prefetch
    # CSR/edge-list aggregation kernel for real graph sizes.

    x_pad = jnp.zeros((N_pad, E_dim), jnp.float32).at[:N].set(x)

    # Flattened, zero-padded weights: (Din, R*Dout_pad), bf16.
    w1_p = jnp.zeros((R, E_dim, H_pad), jnp.float32).at[:, :, :H_dim].set(w1)
    w1_flat = jnp.transpose(w1_p, (1, 0, 2)).reshape(E_dim, R * H_pad).astype(jnp.bfloat16)
    w2_p = jnp.zeros((R, H_pad, E_pad), jnp.float32).at[:, :H_dim, :E_dim].set(w2)
    w2_flat = jnp.transpose(w2_p, (1, 0, 2)).reshape(H_pad, R * E_pad).astype(jnp.bfloat16)

    g1 = jnp.zeros((H_pad,), jnp.float32).at[:H_dim].set(params["ln1_g"])
    b1 = jnp.zeros((H_pad,), jnp.float32).at[:H_dim].set(params["ln1_b"])
    g2 = jnp.zeros((E_pad,), jnp.float32).at[:E_dim].set(params["ln2_g"])
    b2 = jnp.zeros((E_pad,), jnp.float32).at[:E_dim].set(params["ln2_b"])

    res = jnp.zeros((N_pad, E_pad), jnp.float32).at[:N, :E_dim].set(x)

    # Layer 1: propagate -> LayerNorm -> ReLU (fused epilogue).
    # TODO(synk): training-mode dropout (p=0.2) not applied; eval-mode identity.
    x1 = rgcn_layer(x_pad, w1_flat, adj, g1, b1, residual=None,
                    relu=True, d_actual=H_dim, dout_pad=H_pad, tm=tm, tk=tk)

    # Layer 2: propagate -> LayerNorm -> residual add (fused epilogue).
    x2 = rgcn_layer(x1, w2_flat, adj, g2, b2, residual=res,
                    relu=False, d_actual=E_dim, dout_pad=E_pad, tm=tm, tk=tk)
    return x2[:N, :E_dim]


# -----------------------------------------------------------------------------
# Pure-JAX f32 reference (scatter-add semantics of _propagate_chunked).
# -----------------------------------------------------------------------------
def _ref_propagate(x, weight, src, dst, edge_type, out_dim):
    msgs = jnp.einsum("ed,edo->eo", x[src], weight[edge_type])
    return jnp.zeros((x.shape[0], out_dim), jnp.float32).at[dst].add(msgs)


def _ref_ln(x, g, b, eps=_LN_EPS):
    mean = jnp.mean(x, axis=-1, keepdims=True)
    var = jnp.mean((x - mean) ** 2, axis=-1, keepdims=True)
    return (x - mean) * jax.lax.rsqrt(var + eps) * g + b


def _ref_forward(params, node_ids, edge_index, edge_type):
    x = params["embedding"][node_ids]
    src, dst = edge_index[0], edge_index[1]
    H = params["weight1"].shape[2]
    E = params["weight2"].shape[2]
    x1 = _ref_propagate(x, params["weight1"], src, dst, edge_type, H)
    x1 = jnp.maximum(_ref_ln(x1, params["ln1_g"], params["ln1_b"]), 0.0)
    x2 = _ref_propagate(x1, params["weight2"], src, dst, edge_type, E)
    x2 = _ref_ln(x2, params["ln2_g"], params["ln2_b"])
    return x2 + x


if __name__ == "__main__":
    # Small, deterministic synthetic problem (exercises all tiling paths).
    num_nodes_table = 512    # embedding table rows
    num_relations = 3
    embedding_dim = 64
    hidden_dim = 128
    num_graph_nodes = 256    # nodes actually in the graph (len(node_ids))
    num_edges = 1024

    key = jax.random.PRNGKey(0)
    k_emb, k_w1, k_w2, k_src, k_dst, k_rel = jax.random.split(key, 6)

    def xavier_uniform(k, shape, fan_in, fan_out):
        bound = (6.0 / (fan_in + fan_out)) ** 0.5
        return jax.random.uniform(k, shape, jnp.float32, -bound, bound)

    params = {
        "embedding": jax.random.normal(k_emb, (num_nodes_table, embedding_dim),
                                       jnp.float32),
        "weight1": xavier_uniform(k_w1, (num_relations, embedding_dim, hidden_dim),
                                  embedding_dim, hidden_dim),
        "weight2": xavier_uniform(k_w2, (num_relations, hidden_dim, embedding_dim),
                                  hidden_dim, embedding_dim),
        # nn.LayerNorm defaults: weight = ones, bias = zeros
        "ln1_g": jnp.ones((hidden_dim,), jnp.float32),
        "ln1_b": jnp.zeros((hidden_dim,), jnp.float32),
        "ln2_g": jnp.ones((embedding_dim,), jnp.float32),
        "ln2_b": jnp.zeros((embedding_dim,), jnp.float32),
    }

    node_ids = jnp.arange(num_graph_nodes, dtype=jnp.int32)
    src = jax.random.randint(k_src, (num_edges,), 0, num_graph_nodes, jnp.int32)
    dst = jax.random.randint(k_dst, (num_edges,), 0, num_graph_nodes, jnp.int32)
    edge_index = jnp.stack([src, dst], axis=0)               # (2, E) like PyTorch
    edge_type = jax.random.randint(k_rel, (num_edges,), 0, num_relations, jnp.int32)

    out = simple_rgcn_forward(params, node_ids, edge_index, edge_type)
    out = jax.block_until_ready(out)

    ref = _ref_forward(params, node_ids, edge_index, edge_type)
    assert out.shape == (num_graph_nodes, embedding_dim)
    # bf16 operands on the MXU path -> tolerance loosened vs. the f32 reference.
    assert jnp.allclose(out, ref, rtol=3e-2, atol=3e-2), "mismatch vs reference"

    print("KERNEL_OK")
</pallas_src>

<mosaic_0001>
module attributes {stable_mosaic.version = 11 : i64} {
  func.func @_xw_kernel(%arg0: i32, %arg1: memref<256x64xbf16, #tpu.memory_space<vmem>>, %arg2: memref<64x384xbf16, #tpu.memory_space<vmem>>, %arg3: memref<256x384xbf16, #tpu.memory_space<vmem>>) attributes {dimension_semantics = [#tpu.dimension_semantics<parallel>], iteration_bounds = array<i64: 1>, scalar_prefetch = 0 : i64, scratch_operands = 0 : i64, tpu.core_type = #tpu.core_type<tc>, window_params = [{transform_indices = @transform_0, window_bounds = array<i64: 256, 64>}, {pipeline_mode = #tpu.pipeline_mode<synchronous>, transform_indices = @transform_1, window_bounds = array<i64: 64, 384>}, {transform_indices = @transform_2, window_bounds = array<i64: 256, 384>}]} {
    %c0 = arith.constant 0 : index
    %c0_0 = arith.constant 0 : index
    %0 = vector.load %arg1[%c0, %c0_0] : memref<256x64xbf16, #tpu.memory_space<vmem>>, vector<256x64xbf16>
    %c0_1 = arith.constant 0 : index
    %c0_2 = arith.constant 0 : index
    %1 = vector.load %arg2[%c0_1, %c0_2] : memref<64x384xbf16, #tpu.memory_space<vmem>>, vector<64x384xbf16>
    %cst = arith.constant dense<0.000000e+00> : vector<256x384xf32>
    %2 = tpu.matmul %0, %1, %cst {dimension_numbers = #tpu.dot_dimension_numbers<[1], [0], [0], [1], [0, 0, 1, 1], [], []>} : vector<256x64xbf16>, vector<64x384xbf16>, vector<256x384xf32> -> vector<256x384xf32>
    %3 = arith.truncf %2 : vector<256x384xf32> to vector<256x384xbf16>
    %c0_3 = arith.constant 0 : index
    %c0_4 = arith.constant 0 : index
    %4 = vector.load %arg3[%c0_3, %c0_4] : memref<256x384xbf16, #tpu.memory_space<vmem>>, vector<256x384xbf16>
    tpu.vector_store %arg3[%c0_3, %c0_4], %3 {strides = array<i32>} : memref<256x384xbf16, #tpu.memory_space<vmem>>, vector<256x384xbf16>,
    return
  }
  func.func @transform_0(%arg0: i32) -> (i32, i32) {
    %c0_i32 = arith.constant 0 : i32
    %c0_i32_0 = arith.constant 0 : i32
    return %arg0, %c0_i32 : i32, i32
  }
  func.func @transform_1(%arg0: i32) -> (i32, i32) {
    %c0_i32 = arith.constant 0 : i32
    %c0_i32_0 = arith.constant 0 : i32
    %c0_i32_1 = arith.constant 0 : i32
    return %c0_i32, %c0_i32_0 : i32, i32
  }
  func.func @transform_2(%arg0: i32) -> (i32, i32) {
    %c0_i32 = arith.constant 0 : i32
    %c0_i32_0 = arith.constant 0 : i32
    return %arg0, %c0_i32 : i32, i32
  }
}

</mosaic_0001>

<bundles_post_ra>
// kernel: tpu_custom_call.1
= control target key start
LH: loop header
LB: loop body
LE: loop exit
PB: predicated region body
PF: predicated region fallthrough
CT: control target
= control target key end

     0   :  { %v1322_v2 = vmov 0   ;;  %vm205_vm0 = vcmask 523264   ;;  %s1480_s0 = inlined_call_operand.vmem [shape: bf16[256,64], index: 0, kind: input, shape index: {}]   ;;  %s1481_s1 = inlined_call_operand.vmem [shape: bf16[64,384], index: 1, kind: input, shape index: {}]   ;;  %s1482_s2 = inlined_call_operand.hbm [shape: bf16[256,384], index: 2, kind: output, shape index: {}]  }
   0x1   :  { %v1268_v0 = vld [vmem:[%s1481_s1 + $0x4c] ss:$12 sps:$4 sm:$0xff]   ;;  %v1270_v1 = vld [vmem:[%s1481_s1 + $0x48] ss:$12 sps:$4 sm:$0xff]   ;;  %286 = vmatprep.mubr.bf16.mxu0 %v1322_v2  ;;  %406 = vmatprep.mubr.bf16.mxu1 %v1322_v2  ;;  %v1273_v4 = vld [vmem:[%s1481_s1 + $0x30] ss:$12 sps:$4 sm:$0xff]  }
   0x2   :  { %262 = vmatprep.subr.bf16.mxu0 %v1268_v0  ;;  %1256 = vmatprep.subr.bf16.mxu1 %v1268_v0  ;;  %v1271_v3 = vld [vmem:[%s1481_s1 + $0x34] ss:$12 sps:$4 sm:$0xff]   ;;  %v1274_v5 = vld [vmem:[%s1481_s1 + $0x1c] ss:$12 sps:$4 sm:$0xff]   ;;  %v1276_v6 = vld [vmem:[%s1481_s1 + $0x18] ss:$12 sps:$4 sm:$0xff]  }
   0x3   :  { %263 = vmatpush1.bf16.msra.mxu0 %v1270_v1  ;;  %1260 = vmatpush1.bf16.msra.mxu1 %v1270_v1  ;;  %v1277_v7 = vld [vmem:[%s1481_s1 + $0x4] ss:$12 sps:$4 sm:$0xff]   ;;  %v1279_v8 = vld [vmem:[%s1481_s1] ss:$12 sps:$4 sm:$0xff]   ;;  %v1291_v16 = vld [vmem:[%s1481_s1 + $0x8] ss:$12 sps:$4 sm:$0xff]  }
   0x4   :  { %264 = vmatprep.subr.bf16.mxu0 %v1271_v3  ;;  %1257 = vmatprep.subr.bf16.mxu1 %v1271_v3  ;;  %v1282_v9 = vld [vmem:[%s1481_s1 + $0x50] ss:$12 sps:$4 sm:$0xff]   ;;  %v1280_v10 = vld [vmem:[%s1480_s0] sm:$0xff]   ;;  %v1283_v14 = vld [vmem:[%s1480_s0 + $0x8] sm:$0xff]  }
   0x5   :  { %v1376_v11 = vld [vmem:[%s1480_s0 + $0x60] sm:$0xff]   ;;  %v1284_v15 = vld [vmem:[%s1480_s0 + $0x68] sm:$0xff]  }
   0x6   :  { %v1285_v12 = vld [vmem:[%s1481_s1 + $0x38] ss:$12 sps:$4 sm:$0xff]   ;;  %v1288_v13 = vld [vmem:[%s1481_s1 + $0x20] ss:$12 sps:$4 sm:$0xff]  }
   0x7   :  { %265 = vmatpush1.bf16.msra.mxu0 %v1273_v4  ;;  %1261 = vmatpush1.bf16.msra.mxu1 %v1273_v4 }
   0x8   :  { %266 = vmatprep.subr.bf16.mxu0 %v1274_v5  ;;  %1258 = vmatprep.subr.bf16.mxu1 %v1274_v5 }
   0xb   :  { %267 = vmatpush1.bf16.msra.mxu0 %v1276_v6  ;;  %1262 = vmatpush1.bf16.msra.mxu1 %v1276_v6 }
   0xc   :  { %268 = vmatprep.subr.bf16.mxu0 %v1277_v7  ;;  %1259 = vmatprep.subr.bf16.mxu1 %v1277_v7 }
   0xf   :  { %269 = vmatpush1.bf16.msra.mxu0 %v1279_v8  ;;  %1263 = vmatpush1.bf16.msra.mxu1 %v1279_v8 }
  0x10   :  { %1216 = vmatprep.subr.bf16.mxu1 %v1282_v9 }
  0x12   :  { %1036 = vmatmul.mubr.msk.bf16.vlgmr.msra.gmra.mxu0 %vm205_vm0, %v1280_v10  ;;  %1048 = vmatmul.mubr.msk.bf16.vlgmr.msra.gmra.mxu1 %vm205_vm0, %v1376_v11 }
  0x13   :  { %1217 = vmatpush3.bf16.msra.mxu1 %v1282_v9  ;;  %296 = vmatprep.mubr.bf16.mxu0 %v1322_v2 }
  0x14   :  { %416 = vmatprep.mubr.bf16.mxu1 %v1322_v2  ;;  %1218 = vmatprep.subr.bf16.mxu1 %v1285_v12 }
  0x17   :  { %1219 = vmatpush3.bf16.msra.mxu1 %v1285_v12 }
  0x18   :  { %1220 = vmatprep.subr.bf16.mxu1 %v1288_v13 }
  0x19   :  { %7 = vsyncpa [#allocation3], 0  ;;  %v1286_v17 = vld [vmem:[%s1480_s0 + $0x10] sm:$0xff]   ;;  %v1289_v19 = vld [vmem:[%s1480_s0 + $0x18] sm:$0xff]  }
  0x1a   :  { %1037 = vmatmul.mubr.msk.bf16.gmra.mxu0 %vm205_vm0, %v1283_v14  ;;  %1049 = vmatmul.mubr.msk.bf16.gmra.mxu1 %vm205_vm0, %v1284_v15  ;;  %v1287_v18 = vld [vmem:[%s1480_s0 + $0x70] sm:$0xff]   ;;  %v1290_v20 = vld [vmem:[%s1480_s0 + $0x78] sm:$0xff]   ;;  %v1292_v21 = vld [vmem:[%s1480_s0 + $0x20] sm:$0xff]  }
  0x1b   :  { %306 = vmatprep.mubr.bf16.mxu0 %v1322_v2  ;;  %426 = vmatprep.mubr.bf16.mxu1 %v1322_v2  ;;  %v1293_v22 = vld [vmem:[%s1480_s0 + $0x28] sm:$0xff]   ;;  %v1294_v23 = vld [vmem:[%s1480_s0 + $0x30] sm:$0xff]   ;;  %v1295_v24 = vld [vmem:[%s1480_s0 + $0x38] sm:$0xff]  }
  0x1c   :  { %1221 = vmatpush3.bf16.msra.mxu1 %v1288_v13  ;;  %v1296_v25 = vld [vmem:[%s1480_s0 + $0x40] sm:$0xff]   ;;  %v1297_v26 = vld [vmem:[%s1480_s0 + $0x48] sm:$0xff]   ;;  %v1298_v27 = vld [vmem:[%s1480_s0 + $0x50] sm:$0xff]  }
  0x1d   :  { %1222 = vmatprep.subr.bf16.mxu1 %v1291_v16  ;;  %v1299_v28 = vld [vmem:[%s1480_s0 + $0x58] sm:$0xff]   ;;  %s1323_s0 = smov [#allocation2]  }
  0x1e   :  { %s997_s8 = sshll.u32 %s1323_s0, 4  ;;  %s998_s8 = int_to_ptr.vmem [resolvable:$true] %s997_s8 }
  0x1f   :  { %s1300_s9 = scalar_lea.vmem %s998_s8, 6144  ;;  %p1305_p1 = scmp.lt.s32.totalorder %s998_s8, %s998_s8 }
  0x20   :  { %1223 = vmatpush3.bf16.msra.mxu1 %v1291_v16  ;;  %p1301_p0 = scmp.ne.s32.totalorder %s998_s8, %s1300_s9  ;;  %p1306_p2 = scmp.lt.s32.totalorder %s1300_s9, %s1300_s9 }
  0x22   :  { %1038 = vmatmul.mubr.msk.bf16.gmra.mxu0 %vm205_vm0, %v1286_v17  ;;  %1050 = vmatmul.mubr.msk.bf16.gmra.mxu1 %vm205_vm0, %v1287_v18  ;;  %p1307_p3 = por %p1306_p2, %p1305_p1 }
  0x23   :  { %316 = vmatprep.mubr.bf16.mxu0 %v1322_v2  ;;  %436 = vmatprep.mubr.bf16.mxu1 %v1322_v2 }
  0x24   :  { %p1308_p4 = pnand %p1307_p3, %p1301_p0 }
  0x2a   :  { %1039 = vmatmul.mubr.msk.bf16.gmra.mxu0 %vm205_vm0, %v1289_v19  ;;  %1051 = vmatmul.mubr.msk.bf16.gmra.mxu1 %vm205_vm0, %v1290_v20 }
  0x2b   :  { %326 = vmatprep.mubr.bf16.mxu0 %v1322_v2  ;;  %1224 = vmatprep.mubr.msk.bf16.mxu1 %vm205_vm0, %v1280_v10 }
  0x32   :  { %1040 = vmatmul.mubr.msk.bf16.gmra.mxu0 %vm205_vm0, %v1292_v21  ;;  %1225 = vmatmul.mubr.msk.bf16.vlgmr.msra.gmra.mxu1 %vm205_vm0, %v1283_v14 }
  0x33   :  { %336 = vmatprep.mubr.bf16.mxu0 %v1322_v2  ;;  %1228 = vmatprep.mubr.msk.bf16.mxu1 %vm205_vm0, %v1286_v17 }
  0x3a   :  { %1041 = vmatmul.mubr.msk.bf16.gmra.mxu0 %vm205_vm0, %v1293_v22  ;;  %1229 = vmatmul.mubr.msk.bf16.gmra.mxu1 %vm205_vm0, %v1289_v19 }
  0x3b   :  { %346 = vmatprep.mubr.bf16.mxu0 %v1322_v2  ;;  %1232 = vmatprep.mubr.msk.bf16.mxu1 %vm205_vm0, %v1292_v21 }
  0x42   :  { %1042 = vmatmul.mubr.msk.bf16.gmra.mxu0 %vm205_vm0, %v1294_v23  ;;  %1233 = vmatmul.mubr.msk.bf16.gmra.mxu1 %vm205_vm0, %v1293_v22 }
  0x43   :  { %356 = vmatprep.mubr.bf16.mxu0 %v1322_v2  ;;  %1236 = vmatprep.mubr.msk.bf16.mxu1 %vm205_vm0, %v1294_v23 }
  0x4a   :  { %1043 = vmatmul.mubr.msk.bf16.gmra.mxu0 %vm205_vm0, %v1295_v24  ;;  %1237 = vmatmul.mubr.msk.bf16.gmra.mxu1 %vm205_vm0, %v1295_v24 }
  0x4b   :  { %366 = vmatprep.mubr.bf16.mxu0 %v1322_v2  ;;  %1240 = vmatprep.mubr.msk.bf16.mxu1 %vm205_vm0, %v1296_v25 }
  0x52   :  { %1044 = vmatmul.mubr.msk.bf16.gmra.mxu0 %vm205_vm0, %v1296_v25  ;;  %1241 = vmatmul.mubr.msk.bf16.gmra.mxu1 %vm205_vm0, %v1297_v26 }
  0x53   :  { %376 = vmatprep.mubr.bf16.mxu0 %v1322_v2  ;;  %1244 = vmatprep.mubr.msk.bf16.mxu1 %vm205_vm0, %v1298_v27 }
  0x5a   :  { %1045 = vmatmul.mubr.msk.bf16.gmra.mxu0 %vm205_vm0, %v1297_v26  ;;  %1245 = vmatmul.mubr.msk.bf16.gmra.mxu1 %vm205_vm0, %v1299_v28 }
  0x5b   :  { %386 = vmatprep.mubr.bf16.mxu0 %v1322_v2  ;;  %1248 = vmatprep.mubr.msk.bf16.mxu1 %vm205_vm0, %v1376_v11 }
  0x62   :  { %1046 = vmatmul.mubr.msk.bf16.gmra.mxu0 %vm205_vm0, %v1298_v27  ;;  %1249 = vmatmul.mubr.msk.bf16.gmra.mxu1 %vm205_vm0, %v1284_v15 }
  0x63   :  { %396 = vmatprep.mubr.bf16.mxu0 %v1322_v2  ;;  %1252 = vmatprep.mubr.msk.bf16.mxu1 %vm205_vm0, %v1287_v18 }
  0x6a   :  { %1047 = vmatmul.mubr.msk.bf16.gmra.mxu0 %vm205_vm0, %v1299_v28  ;;  %1253 = vmatmul.mubr.msk.bf16.gmra.mxu1 %vm205_vm0, %v1290_v20 }
  0xd2   :  { %v288_v29 = vpop.f32.mrf.mxu0  ;;  %v408_v30 = vpop.f32.mrf.mxu1 }
  0xd4   :  { %v290_v31 = vpop.f32.mrf.mxu0  ;;  %v410_v32 = vpop.f32.mrf.mxu1 }
  0xd5   :  { %v1132_v33 = vpack.c.bf16 %v290_v31, %v288_v29  ;;  %v1180_v34 = vpack.c.bf16 %v410_v32, %v408_v30 }
  0xd6   :  { %v292_v35 = vpop.f32.mrf.mxu0  ;;  %v412_v36 = vpop.f32.mrf.mxu1 }
  0xd7   :  { %928 = vst [vmem:[#allocation2] sm:$0xff] %v1132_v33  ;;  %976 = vst [vmem:[#allocation2 + $0x120] sm:$0xff] %v1180_v34 }
  0xd8   :  { %v294_v37 = vpop.f32.mrf.mxu0  ;;  %v414_v38 = vpop.f32.mrf.mxu1 }
  0xd9   :  { %v1134_v39 = vpack.c.bf16 %v294_v37, %v292_v35  ;;  %v1182_v40 = vpack.c.bf16 %v414_v38, %v412_v36 }
  0xda   :  { %v298_v41 = vpop.f32.mrf.mxu0  ;;  %v418_v42 = vpop.f32.mrf.mxu1 }
  0xdb   :  { %930 = vst [vmem:[#allocation2 + $0xc] sm:$0xff] %v1134_v39  ;;  %978 = vst [vmem:[#allocation2 + $0x12c] sm:$0xff] %v1182_v40 }
  0xdc   :  { %v300_v43 = vpop.f32.mrf.mxu0  ;;  %v420_v44 = vpop.f32.mrf.mxu1 }
  0xdd   :  { %v1136_v45 = vpack.c.bf16 %v300_v43, %v298_v41  ;;  %v1184_v46 = vpack.c.bf16 %v420_v44, %v418_v42 }
  0xde   :  { %v302_v47 = vpop.f32.mrf.mxu0  ;;  %v422_v48 = vpop.f32.mrf.mxu1 }
  0xdf   :  { %932 = vst [vmem:[#allocation2 + $0x18] sm:$0xff] %v1136_v45  ;;  %980 = vst [vmem:[#allocation2 + $0x138] sm:$0xff] %v1184_v46 }
  0xe0   :  { %v304_v49 = vpop.f32.mrf.mxu0  ;;  %v424_v50 = vpop.f32.mrf.mxu1 }
  0xe1   :  { %v1138_v51 = vpack.c.bf16 %v304_v49, %v302_v47  ;;  %v1186_v52 = vpack.c.bf16 %v424_v50, %v422_v48 }
  0xe2   :  { %v308_v53 = vpop.f32.mrf.mxu0  ;;  %v428_v54 = vpop.f32.mrf.mxu1 }
  0xe3   :  { %934 = vst [vmem:[#allocation2 + $0x24] sm:$0xff] %v1138_v51  ;;  %982 = vst [vmem:[#allocation2 + $0x144] sm:$0xff] %v1186_v52 }
  0xe4   :  { %v310_v55 = vpop.f32.mrf.mxu0  ;;  %v430_v56 = vpop.f32.mrf.mxu1 }
  0xe5   :  { %v1140_v57 = vpack.c.bf16 %v310_v55, %v308_v53  ;;  %v1188_v58 = vpack.c.bf16 %v430_v56, %v428_v54 }
  0xe6   :  { %v312_v59 = vpop.f32.mrf.mxu0  ;;  %v432_v60 = vpop.f32.mrf.mxu1 }
  0xe7   :  { %936 = vst [vmem:[#allocation2 + $0x30] sm:$0xff] %v1140_v57  ;;  %984 = vst [vmem:[#allocation2 + $0x150] sm:$0xff] %v1188_v58 }
  0xe8   :  { %v314_v61 = vpop.f32.mrf.mxu0  ;;  %v434_v62 = vpop.f32.mrf.mxu1 }
  0xe9   :  { %v1142_v63 = vpack.c.bf16 %v314_v61, %v312_v59  ;;  %v1190_v0 = vpack.c.bf16 %v434_v62, %v432_v60 }
  0xea   :  { %v318_v1 = vpop.f32.mrf.mxu0  ;;  %v438_v2 = vpop.f32.mrf.mxu1 }
  0xeb   :  { %938 = vst [vmem:[#allocation2 + $0x3c] sm:$0xff] %v1142_v63  ;;  %986 = vst [vmem:[#allocation2 + $0x15c] sm:$0xff] %v1190_v0 }
  0xec   :  { %v320_v3 = vpop.f32.mrf.mxu0  ;;  %v440_v4 = vpop.f32.mrf.mxu1 }
  0xed   :  { %v1144_v5 = vpack.c.bf16 %v320_v3, %v318_v1  ;;  %v1192_v6 = vpack.c.bf16 %v440_v4, %v438_v2 }
  0xee   :  { %v322_v7 = vpop.f32.mrf.mxu0  ;;  %v442_v8 = vpop.f32.mrf.mxu1 }
  0xef   :  { %940 = vst [vmem:[#allocation2 + $0x48] sm:$0xff] %v1144_v5  ;;  %988 = vst [vmem:[#allocation2 + $0x168] sm:$0xff] %v1192_v6 }
  0xf0   :  { %v324_v9 = vpop.f32.mrf.mxu0  ;;  %v444_v10 = vpop.f32.mrf.mxu1 }
  0xf1   :  { %v1146_v11 = vpack.c.bf16 %v324_v9, %v322_v7  ;;  %v1194_v12 = vpack.c.bf16 %v444_v10, %v442_v8 }
  0xf2   :  { %v328_v13 = vpop.f32.mrf.mxu0  ;;  %v1226_v14 = vpop.f32.mrf.mxu1 }
  0xf3   :  { %942 = vst [vmem:[#allocation2 + $0x54] sm:$0xff] %v1146_v11  ;;  %990 = vst [vmem:[#allocation2 + $0x174] sm:$0xff] %v1194_v12  ;;  %v1137_v15 = vpack.c.bf16 %v1226_v14, %v1226_v14 }
  0xf4   :  { %v330_v16 = vpop.f32.mrf.mxu0  ;;  %v481_v17 = vpop.f32.mrf.mxu1 }
  0xf5   :  { %933 = vst [vmem:[#allocation2 + $0x20] sm:$0xf] %v1137_v15  ;;  %v1148_v18 = vpack.c.bf16 %v330_v16, %v328_v13  ;;  %v1133_v19 = vpack.c.bf16 %v481_v17, %v481_v17 }
  0xf6   :  { %v332_v20 = vpop.f32.mrf.mxu0  ;;  %v1227_v21 = vpop.f32.mrf.mxu1 }
  0xf7   :  { %944 = vst [vmem:[#allocation2 + $0x60] sm:$0xff] %v1148_v18  ;;  %929 = vst [vmem:[#allocation2 + $0x8] sm:$0xf] %v1133_v19  ;;  %v1139_v22 = vpack.c.bf16 %v1227_v21, %v1227_v21 }
  0xf8   :  { %v334_v23 = vpop.f32.mrf.mxu0  ;;  %v484_v24 = vpop.f32.mrf.mxu1 }
  0xf9   :  { %935 = vst [vmem:[#allocation2 + $0x2c] sm:$0xf] %v1139_v22  ;;  %v1150_v25 = vpack.c.bf16 %v334_v23, %v332_v20  ;;  %v1135_v26 = vpack.c.bf16 %v484_v24, %v484_v24 }
  0xfa   :  { %v338_v27 = vpop.f32.mrf.mxu0  ;;  %v1230_v28 = vpop.f32.mrf.mxu1 }
  0xfb   :  { %946 = vst [vmem:[#allocation2 + $0x6c] sm:$0xff] %v1150_v25  ;;  %931 = vst [vmem:[#allocation2 + $0x14] sm:$0xf] %v1135_v26  ;;  %v1145_v29 = vpack.c.bf16 %v1230_v28, %v1230_v28 }
  0xfc   :  { %v340_v30 = vpop.f32.mrf.mxu0  ;;  %v497_v31 = vpop.f32.mrf.mxu1 }
  0xfd   :  { %941 = vst [vmem:[#allocation2 + $0x50] sm:$0xf] %v1145_v29  ;;  %v1152_v32 = vpack.c.bf16 %v340_v30, %v338_v27  ;;  %v1141_v33 = vpack.c.bf16 %v497_v31, %v497_v31 }
  0xfe   :  { %v342_v34 = vpop.f32.mrf.mxu0  ;;  %v1231_v35 = vpop.f32.mrf.mxu1 }
  0xff   :  { %948 = vst [vmem:[#allocation2 + $0x78] sm:$0xff] %v1152_v32  ;;  %937 = vst [vmem:[#allocation2 + $0x38] sm:$0xf] %v1141_v33  ;;  %v1147_v36 = vpack.c.bf16 %v1231_v35, %v1231_v35 }
 0x100   :  { %v344_v37 = vpop.f32.mrf.mxu0  ;;  %v500_v38 = vpop.f32.mrf.mxu1 }
 0x101   :  { %943 = vst [vmem:[#allocation2 + $0x5c] sm:$0xf] %v1147_v36  ;;  %v1154_v39 = vpack.c.bf16 %v344_v37, %v342_v34  ;;  %v1143_v40 = vpack.c.bf16 %v500_v38, %v500_v38 }
 0x102   :  { %v348_v41 = vpop.f32.mrf.mxu0  ;;  %v1234_v42 = vpop.f32.mrf.mxu1 }
 0x103   :  { %950 = vst [vmem:[#allocation2 + $0x84] sm:$0xff] %v1154_v39  ;;  %939 = vst [vmem:[#allocation2 + $0x44] sm:$0xf] %v1143_v40  ;;  %v1153_v43 = vpack.c.bf16 %v1234_v42, %v1234_v42 }
 0x104   :  { %v350_v44 = vpop.f32.mrf.mxu0  ;;  %v513_v45 = vpop.f32.mrf.mxu1 }
 0x105   :  { %949 = vst [vmem:[#allocation2 + $0x80] sm:$0xf] %v1153_v43  ;;  %v1156_v46 = vpack.c.bf16 %v350_v44, %v348_v41  ;;  %v1149_v47 = vpack.c.bf16 %v513_v45, %v513_v45 }
 0x106   :  { %v352_v48 = vpop.f32.mrf.mxu0  ;;  %v1235_v49 = vpop.f32.mrf.mxu1 }
 0x107   :  { %952 = vst [vmem:[#allocation2 + $0x90] sm:$0xff] %v1156_v46  ;;  %945 = vst [vmem:[#allocation2 + $0x68] sm:$0xf] %v1149_v47  ;;  %v1155_v50 = vpack.c.bf16 %v1235_v49, %v1235_v49 }
 0x108   :  { %v354_v51 = vpop.f32.mrf.mxu0  ;;  %v516_v52 = vpop.f32.mrf.mxu1 }
 0x109   :  { %951 = vst [vmem:[#allocation2 + $0x8c] sm:$0xf] %v1155_v50  ;;  %v1158_v53 = vpack.c.bf16 %v354_v51, %v352_v48  ;;  %v1151_v54 = vpack.c.bf16 %v516_v52, %v516_v52 }
 0x10a   :  { %v358_v55 = vpop.f32.mrf.mxu0  ;;  %v1238_v56 = vpop.f32.mrf.mxu1 }
 0x10b   :  { %954 = vst [vmem:[#allocation2 + $0x9c] sm:$0xff] %v1158_v53  ;;  %947 = vst [vmem:[#allocation2 + $0x74] sm:$0xf] %v1151_v54  ;;  %v1161_v57 = vpack.c.bf16 %v1238_v56, %v1238_v56 }
 0x10c   :  { %v360_v58 = vpop.f32.mrf.mxu0  ;;  %v529_v59 = vpop.f32.mrf.mxu1 }
 0x10d   :  { %957 = vst [vmem:[#allocation2 + $0xb0] sm:$0xf] %v1161_v57  ;;  %v1160_v60 = vpack.c.bf16 %v360_v58, %v358_v55  ;;  %v1157_v61 = vpack.c.bf16 %v529_v59, %v529_v59 }
 0x10e   :  { %v362_v62 = vpop.f32.mrf.mxu0  ;;  %v1239_v63 = vpop.f32.mrf.mxu1 }
 0x10f   :  { %956 = vst [vmem:[#allocation2 + $0xa8] sm:$0xff] %v1160_v60  ;;  %953 = vst [vmem:[#allocation2 + $0x98] sm:$0xf] %v1157_v61  ;;  %v1163_v0 = vpack.c.bf16 %v1239_v63, %v1239_v63 }
 0x110   :  { %v364_v1 = vpop.f32.mrf.mxu0  ;;  %v532_v2 = vpop.f32.mrf.mxu1 }
 0x111   :  { %959 = vst [vmem:[#allocation2 + $0xbc] sm:$0xf] %v1163_v0  ;;  %v1162_v3 = vpack.c.bf16 %v364_v1, %v362_v62  ;;  %v1159_v4 = vpack.c.bf16 %v532_v2, %v532_v2 }
 0x112   :  { %v368_v5 = vpop.f32.mrf.mxu0  ;;  %v1242_v6 = vpop.f32.mrf.mxu1 }
 0x113   :  { %958 = vst [vmem:[#allocation2 + $0xb4] sm:$0xff] %v1162_v3  ;;  %955 = vst [vmem:[#allocation2 + $0xa4] sm:$0xf] %v1159_v4  ;;  %v1169_v7 = vpack.c.bf16 %v1242_v6, %v1242_v6 }
 0x114   :  { %v370_v8 = vpop.f32.mrf.mxu0  ;;  %v545_v9 = vpop.f32.mrf.mxu1 }
 0x115   :  { %965 = vst [vmem:[#allocation2 + $0xe0] sm:$0xf] %v1169_v7  ;;  %v1164_v10 = vpack.c.bf16 %v370_v8, %v368_v5  ;;  %v1165_v11 = vpack.c.bf16 %v545_v9, %v545_v9 }
 0x116   :  { %v372_v12 = vpop.f32.mrf.mxu0  ;;  %v1243_v13 = vpop.f32.mrf.mxu1 }
 0x117   :  { %960 = vst [vmem:[#allocation2 + $0xc0] sm:$0xff] %v1164_v10  ;;  %961 = vst [vmem:[#allocation2 + $0xc8] sm:$0xf] %v1165_v11  ;;  %v1171_v14 = vpack.c.bf16 %v1243_v13, %v1243_v13 }
 0x118   :  { %v374_v15 = vpop.f32.mrf.mxu0  ;;  %v548_v16 = vpop.f32.mrf.mxu1 }
 0x119   :  { %967 = vst [vmem:[#allocation2 + $0xec] sm:$0xf] %v1171_v14  ;;  %v1166_v17 = vpack.c.bf16 %v374_v15, %v372_v12  ;;  %v1167_v18 = vpack.c.bf16 %v548_v16, %v548_v16 }
 0x11a   :  { %v378_v19 = vpop.f32.mrf.mxu0  ;;  %v1246_v20 = vpop.f32.mrf.mxu1 }
 0x11b   :  { %962 = vst [vmem:[#allocation2 + $0xcc] sm:$0xff] %v1166_v17  ;;  %963 = vst [vmem:[#allocation2 + $0xd4] sm:$0xf] %v1167_v18  ;;  %v1177_v21 = vpack.c.bf16 %v1246_v20, %v1246_v20 }
 0x11c   :  { %v380_v22 = vpop.f32.mrf.mxu0  ;;  %v561_v23 = vpop.f32.mrf.mxu1 }
 0x11d   :  { %973 = vst [vmem:[#allocation2 + $0x110] sm:$0xf] %v1177_v21  ;;  %v1168_v24 = vpack.c.bf16 %v380_v22, %v378_v19  ;;  %v1173_v25 = vpack.c.bf16 %v561_v23, %v561_v23 }
 0x11e   :  { %v382_v26 = vpop.f32.mrf.mxu0  ;;  %v1247_v27 = vpop.f32.mrf.mxu1 }
 0x11f   :  { %964 = vst [vmem:[#allocation2 + $0xd8] sm:$0xff] %v1168_v24  ;;  %969 = vst [vmem:[#allocation2 + $0xf8] sm:$0xf] %v1173_v25  ;;  %v1179_v28 = vpack.c.bf16 %v1247_v27, %v1247_v27 }
 0x120   :  { %v384_v29 = vpop.f32.mrf.mxu0  ;;  %v564_v30 = vpop.f32.mrf.mxu1 }
 0x121   :  { %975 = vst [vmem:[#allocation2 + $0x11c] sm:$0xf] %v1179_v28  ;;  %v1170_v31 = vpack.c.bf16 %v384_v29, %v382_v26  ;;  %v1175_v32 = vpack.c.bf16 %v564_v30, %v564_v30 }
 0x122   :  { %v388_v33 = vpop.f32.mrf.mxu0  ;;  %v1250_v34 = vpop.f32.mrf.mxu1 }
 0x123   :  { %966 = vst [vmem:[#allocation2 + $0xe4] sm:$0xff] %v1170_v31  ;;  %971 = vst [vmem:[#allocation2 + $0x104] sm:$0xf] %v1175_v32  ;;  %v1185_v35 = vpack.c.bf16 %v1250_v34, %v1250_v34 }
 0x124   :  { %v390_v36 = vpop.f32.mrf.mxu0  ;;  %v577_v37 = vpop.f32.mrf.mxu1 }
 0x125   :  { %981 = vst [vmem:[#allocation2 + $0x140] sm:$0xf] %v1185_v35  ;;  %v1172_v38 = vpack.c.bf16 %v390_v36, %v388_v33  ;;  %v1181_v39 = vpack.c.bf16 %v577_v37, %v577_v37 }
 0x126   :  { %v392_v40 = vpop.f32.mrf.mxu0  ;;  %v1251_v41 = vpop.f32.mrf.mxu1 }
 0x127   :  { %968 = vst [vmem:[#allocation2 + $0xf0] sm:$0xff] %v1172_v38  ;;  %977 = vst [vmem:[#allocation2 + $0x128] sm:$0xf] %v1181_v39  ;;  %v1187_v42 = vpack.c.bf16 %v1251_v41, %v1251_v41 }
 0x128   :  { %v394_v43 = vpop.f32.mrf.mxu0  ;;  %v580_v44 = vpop.f32.mrf.mxu1 }
 0x129   :  { %983 = vst [vmem:[#allocation2 + $0x14c] sm:$0xf] %v1187_v42  ;;  %v1174_v45 = vpack.c.bf16 %v394_v43, %v392_v40  ;;  %v1183_v46 = vpack.c.bf16 %v580_v44, %v580_v44 }
 0x12a   :  { %v398_v47 = vpop.f32.mrf.mxu0  ;;  %v1254_v48 = vpop.f32.mrf.mxu1 }
 0x12b   :  { %970 = vst [vmem:[#allocation2 + $0xfc] sm:$0xff] %v1174_v45  ;;  %979 = vst [vmem:[#allocation2 + $0x134] sm:$0xf] %v1183_v46  ;;  %v1193_v49 = vpack.c.bf16 %v1254_v48, %v1254_v48 }
 0x12c   :  { %v400_v50 = vpop.f32.mrf.mxu0  ;;  %v593_v51 = vpop.f32.mrf.mxu1 }
 0x12d   :  { %989 = vst [vmem:[#allocation2 + $0x170] sm:$0xf] %v1193_v49  ;;  %v1176_v52 = vpack.c.bf16 %v400_v50, %v398_v47  ;;  %v1189_v53 = vpack.c.bf16 %v593_v51, %v593_v51 }
 0x12e   :  { %v402_v54 = vpop.f32.mrf.mxu0  ;;  %v1255_v55 = vpop.f32.mrf.mxu1 }
 0x12f   :  { %972 = vst [vmem:[#allocation2 + $0x108] sm:$0xff] %v1176_v52  ;;  %985 = vst [vmem:[#allocation2 + $0x158] sm:$0xf] %v1189_v53  ;;  %v1195_v56 = vpack.c.bf16 %v1255_v55, %v1255_v55 }
 0x130   :  { %v404_v57 = vpop.f32.mrf.mxu0  ;;  %v596_v58 = vpop.f32.mrf.mxu1 }
 0x131   :  { %991 = vst [vmem:[#allocation2 + $0x17c] sm:$0xf] %v1195_v56  ;;  %v1178_v59 = vpack.c.bf16 %v404_v57, %v402_v54  ;;  %v1191_v60 = vpack.c.bf16 %v596_v58, %v596_v58 }
 0x133   :  { %974 = vst [vmem:[#allocation2 + $0x114] sm:$0xff] %v1178_v59  ;;  %987 = vst [vmem:[#allocation2 + $0x164] sm:$0xf] %v1191_v60 }
 0x134   :  { %1311 = shalt.err (!%p1308_p4)
}
 0x135   :  { %s1324_s10 = smov 192   ;;  %s1325_s11 = smov 12  }
 0x136   :  { %1003 = dma.vmem_to_hbm [thread:$0]  %s998_s8, 6144, %s1482_s2, [#allocation3], %s1324_s10, %s1324_s10, %s1325_s11  }
 0x137   :  { %1320 = dma.done.wait [#allocation3], 6144  }
 0x138   :  { %1321 = vsyncadd [#allocation3], 4294961152 }
 0x139   :  { %1007 = vsyncpa [#allocation3], 1 }

</bundles_post_ra>
